<compile_context>
chip_gen: v6e
topology: v6e:2x2x1
jax: 0.10.0
libtpu: 0.0.40
codegen_flags: <defaults>
</compile_context>

<pallas_src>
import jax
import jax.numpy as jnp
from jax import lax
from jax.experimental import pallas as pl
from jax.experimental.pallas import tpu as pltpu

BN_EPS = 1e-5
_LANE = 128
# Working-set budget for the fully-resident single-call path (input + output +
# two f32 temporaries); conservative for the 16 MiB default scoped VMEM on v5e.
_RESIDENT_BUDGET_BYTES = 10 * 1024 * 1024
# Per-stream buffer budget for one (B, C, TL) tile in the pipelined path
# (double-buffered input + output stays well under the default scoped limit).
_TILE_BUDGET_BYTES = 4 * 1024 * 1024


# --------------------------------------------------------------------------
# Fully VMEM-resident kernels (no grid, no double buffering)
# --------------------------------------------------------------------------
def _cbn3d_resident_kernel(x_ref, gamma_ref, beta_ref, o_ref):
    # x_ref/o_ref: (B, C, L), gamma_ref/beta_ref: (B, C) f32
    B, C, L = x_ref.shape
    inv_n = 1.0 / float(B * L)
    xs = x_ref[...].astype(jnp.float32)                  # single load of the slab
    s = jnp.sum(jnp.sum(xs, axis=2, keepdims=True), axis=0, keepdims=True)  # (1,C,1)
    mean = s * inv_n
    d = xs - mean                                         # reused for var AND output
    var = jnp.sum(jnp.sum(d * d, axis=2, keepdims=True), axis=0,
                  keepdims=True) * inv_n                  # biased (1/N) variance
    inv_std = lax.rsqrt(var + BN_EPS)                     # (1, C, 1)
    scale = gamma_ref[...][:, :, None] * inv_std          # (B, C, 1)
    beta = beta_ref[...][:, :, None]                      # (B, C, 1)
    o_ref[...] = (d * scale + beta).astype(o_ref.dtype)   # one full-block store


def _cbn2d_resident_kernel(x_ref, gamma_ref, beta_ref, o_ref):
    # Lane-dense 2-D path: x_ref/o_ref (B, C) with C on lanes, reduce over B.
    B, C = x_ref.shape
    inv_n = 1.0 / float(B)
    xs = x_ref[...].astype(jnp.float32)
    mean = jnp.sum(xs, axis=0, keepdims=True) * inv_n     # (1, C)
    d = xs - mean
    var = jnp.sum(d * d, axis=0, keepdims=True) * inv_n
    inv_std = lax.rsqrt(var + BN_EPS)
    scale = gamma_ref[...] * inv_std                      # (B, C)
    o_ref[...] = (d * scale + beta_ref[...]).astype(o_ref.dtype)


def _cbn3d_resident(x, gamma_b, beta_b):
    B, C, L = x.shape
    vmem = pltpu.MemorySpace.VMEM
    return pl.pallas_call(
        _cbn3d_resident_kernel,
        out_shape=jax.ShapeDtypeStruct((B, C, L), x.dtype),
        in_specs=[pl.BlockSpec(memory_space=vmem)] * 3,
        out_specs=pl.BlockSpec(memory_space=vmem),
    )(x, gamma_b, beta_b)


def _cbn2d_resident(x, gamma_b, beta_b):
    B, C = x.shape
    vmem = pltpu.MemorySpace.VMEM
    return pl.pallas_call(
        _cbn2d_resident_kernel,
        out_shape=jax.ShapeDtypeStruct((B, C), x.dtype),
        in_specs=[pl.BlockSpec(memory_space=vmem)] * 3,
        out_specs=pl.BlockSpec(memory_space=vmem),
    )(x, gamma_b, beta_b)


# --------------------------------------------------------------------------
# Two-phase L-tiled pipeline for slabs larger than the resident budget
# --------------------------------------------------------------------------
def _cbn_stats_kernel(x_ref, stat_ref):
    # Accumulate per-channel sum and sum-of-squares over L-tiles (grid axis
    # "arbitrary"; stat block is resident across the whole grid).
    @pl.when(pl.program_id(0) == 0)
    def _init():
        stat_ref[...] = jnp.zeros_like(stat_ref)

    xs = x_ref[...].astype(jnp.float32)                   # (B, C, TL) — one read
    s_bc = jnp.sum(xs, axis=2)                            # (B, C)
    ss_bc = jnp.sum(xs * xs, axis=2)                       # (B, C)
    s = jnp.sum(s_bc, axis=0, keepdims=True)               # (1, C)
    ss = jnp.sum(ss_bc, axis=0, keepdims=True)              # (1, C)
    stat_ref[...] += jnp.concatenate([s, ss], axis=0)       # (2, C)


def _cbn_apply_kernel(x_ref, scale_ref, shift_ref, o_ref):
    # Fused normalize + conditional affine on one (B, C, TL) tile.
    xs = x_ref[...].astype(jnp.float32)
    scale = scale_ref[...][:, :, None]                      # (B, C, 1)
    shift = shift_ref[...][:, :, None]
    o_ref[...] = (xs * scale + shift).astype(o_ref.dtype)


def _choose_l_tile(B, C, L, itemsize, l_tile=None):
    if l_tile is None:
        cap = max(_LANE, _TILE_BUDGET_BYTES // max(1, B * C * itemsize))
        tl = min(L, (cap // _LANE) * _LANE)
    else:
        tl = l_tile
    tl = max(_LANE, (tl // _LANE) * _LANE)
    while L % tl != 0:          # L % 128 == 0 guaranteed by the caller -> terminates
        tl -= _LANE
    return tl


def _cbn3d_tiled(x, gamma_b, beta_b, l_tile=None):
    B, C, L = x.shape
    itemsize = jnp.dtype(x.dtype).itemsize
    tl = _choose_l_tile(B, C, L, itemsize, l_tile)
    nlt = L // tl

    # Phase 1: per-channel sum / sum-of-squares, pipelined over L-tiles.
    stats = pl.pallas_call(
        _cbn_stats_kernel,
        out_shape=jax.ShapeDtypeStruct((2, C), jnp.float32),
        grid=(nlt,),
        in_specs=[pl.BlockSpec((B, C, tl), lambda l: (0, 0, l))],
        out_specs=pl.BlockSpec((2, C), lambda l: (0, 0)),
        compiler_params=pltpu.CompilerParams(dimension_semantics=("arbitrary",)),
    )(x)

    # Tiny (C,)/(B, C) math stays in the wrapper (negligible, keeps kernels simple).
    inv_n = 1.0 / float(B * L)
    mean = stats[0] * inv_n
    # Single-pass variance E[x^2] - mean^2: f32 accumulation keeps the cancellation
    # error negligible for typical GAN activation magnitudes; clamp at 0 for safety.
    var = jnp.maximum(stats[1] * inv_n - mean * mean, 0.0)
    inv_std = lax.rsqrt(var + BN_EPS)                       # (C,)
    scale_b = gamma_b * inv_std[None, :]                    # (B, C)
    shift_b = beta_b - mean[None, :] * scale_b              # (B, C)

    # Phase 2: apply fused scale/shift, pipelined + megacore-parallel over L-tiles.
    return pl.pallas_call(
        _cbn_apply_kernel,
        out_shape=jax.ShapeDtypeStruct((B, C, L), x.dtype),
        grid=(nlt,),
        in_specs=[pl.BlockSpec((B, C, tl), lambda l: (0, 0, l)),
                  pl.BlockSpec((B, C), lambda l: (0, 0)),
                  pl.BlockSpec((B, C), lambda l: (0, 0))],
        out_specs=pl.BlockSpec((B, C, tl), lambda l: (0, 0, l)),
        compiler_params=pltpu.CompilerParams(dimension_semantics=("parallel",)),
    )(x, scale_b, shift_b)


# --------------------------------------------------------------------------
# Public wrapper
# --------------------------------------------------------------------------
def conditional_batch_norm1d(x, labels, gamma_tab, beta_tab, *,
                             force_tiled=False, l_tile=None):
    """x: (B, C) or (B, C, L) (f32 or bf16); labels: (B,) int; tables: (num_classes, C)."""
    # Label -> (gamma, beta) gather in the wrapper: tiny, free, removes the only
    # MXU use and all one-hot/iota filler from the kernels.
    gamma_b = jnp.asarray(gamma_tab, jnp.float32)[labels]   # (B, C)
    beta_b = jnp.asarray(beta_tab, jnp.float32)[labels]     # (B, C)

    if x.ndim == 2:
        return _cbn2d_resident(x, gamma_b, beta_b)

    assert x.ndim == 3, "expected (B, C) or (B, C, L)"
    B, C, L = x.shape
    itemsize = jnp.dtype(x.dtype).itemsize
    resident_bytes = B * C * L * (2 * itemsize + 8)          # in + out + 2 f32 temps
    can_tile = (L % _LANE == 0)

    if can_tile and (force_tiled or resident_bytes > _RESIDENT_BUDGET_BYTES):
        return _cbn3d_tiled(x, gamma_b, beta_b, l_tile=l_tile)
    # TODO(synk): slabs larger than VMEM whose L is not a multiple of 128 still take
    # the resident path; pad L in the caller (or add tail masking) for that case.
    return _cbn3d_resident(x, gamma_b, beta_b)


# ---------------- pure-JAX reference (PyTorch semantics) ----------------
def conditional_batch_norm1d_ref(x, labels, gamma_tab, beta_tab, eps=BN_EPS):
    if x.ndim == 2:
        mean = jnp.mean(x, axis=0, keepdims=True)
        var = jnp.mean((x - mean) ** 2, axis=0, keepdims=True)
        xn = (x - mean) / jnp.sqrt(var + eps)
        return gamma_tab[labels] * xn + beta_tab[labels]
    mean = jnp.mean(x, axis=(0, 2), keepdims=True)
    var = jnp.mean((x - mean) ** 2, axis=(0, 2), keepdims=True)
    xn = (x - mean) / jnp.sqrt(var + eps)
    return gamma_tab[labels][:, :, None] * xn + beta_tab[labels][:, :, None]


if __name__ == "__main__":
    key = jax.random.PRNGKey(0)
    NUM_CLASSES, C = 21, 16
    kx, kl, kg, kb, kx2, kl2, kx3, kl3 = jax.random.split(key, 8)

    # Module default init is gamma=1, beta=0; perturb so the label path is exercised.
    gamma_tab = 1.0 + 0.1 * jax.random.normal(kg, (NUM_CLASSES, C), jnp.float32)
    beta_tab = 0.1 * jax.random.normal(kb, (NUM_CLASSES, C), jnp.float32)

    # --- 3-D resident path (B, C, L) ---
    B, L = 4, 128
    x = jax.random.normal(kx, (B, C, L), jnp.float32) * 2.0 + 0.5
    labels = jax.random.randint(kl, (B,), 0, NUM_CLASSES)
    y = jax.block_until_ready(conditional_batch_norm1d(x, labels, gamma_tab, beta_tab))
    y_ref = conditional_batch_norm1d_ref(x, labels, gamma_tab, beta_tab)
    err3 = float(jnp.max(jnp.abs(y - y_ref)))
    assert y.shape == (B, C, L)
    assert bool(jnp.all(jnp.isfinite(y))), "non-finite output (3D resident)"
    assert err3 < 1e-3, f"3D resident mismatch vs reference, max_err={err3}"

    # --- 3-D two-phase L-tiled path (forced, 2 tiles of 128) ---
    B3, L3 = 2, 256
    x3 = jax.random.normal(kx3, (B3, C, L3), jnp.float32) * 1.5 - 0.25
    labels3 = jax.random.randint(kl3, (B3,), 0, NUM_CLASSES)
    y3 = jax.block_until_ready(conditional_batch_norm1d(
        x3, labels3, gamma_tab, beta_tab, force_tiled=True, l_tile=128))
    y3_ref = conditional_batch_norm1d_ref(x3, labels3, gamma_tab, beta_tab)
    err3t = float(jnp.max(jnp.abs(y3 - y3_ref)))
    assert y3.shape == (B3, C, L3)
    assert bool(jnp.all(jnp.isfinite(y3))), "non-finite output (3D tiled)"
    assert err3t < 1e-3, f"3D tiled mismatch vs reference, max_err={err3t}"

    # --- 2-D lane-dense path (B, C) ---
    B2 = 8
    x2 = jax.random.normal(kx2, (B2, C), jnp.float32)
    labels2 = jax.random.randint(kl2, (B2,), 0, NUM_CLASSES)
    y2 = jax.block_until_ready(conditional_batch_norm1d(x2, labels2, gamma_tab, beta_tab))
    y2_ref = conditional_batch_norm1d_ref(x2, labels2, gamma_tab, beta_tab)
    err2 = float(jnp.max(jnp.abs(y2 - y2_ref)))
    assert y2.shape == (B2, C)
    assert bool(jnp.all(jnp.isfinite(y2))), "non-finite output (2D)"
    assert err2 < 1e-3, f"2D mismatch vs reference, max_err={err2}"

    # TODO(synk): running_mean/running_var buffer updates (training side effect of
    # nn.BatchNorm1d) are not modeled; only the forward output is produced.
    print("KERNEL_OK")
</pallas_src>

<mosaic_0001>
module attributes {stable_mosaic.version = 11 : i64} {
  func.func @_cbn3d_resident_kernel(%arg0: memref<4x16x128xf32, #tpu.memory_space<vmem>>, %arg1: memref<4x16xf32, #tpu.memory_space<vmem>>, %arg2: memref<4x16xf32, #tpu.memory_space<vmem>>, %arg3: memref<4x16x128xf32, #tpu.memory_space<vmem>>) attributes {dimension_semantics = [], scalar_prefetch = 0 : i64, scratch_operands = 0 : i64, tpu.core_type = #tpu.core_type<tc>} {
    %c0 = arith.constant 0 : index
    %c0_0 = arith.constant 0 : index
    %c0_1 = arith.constant 0 : index
    %0 = vector.load %arg0[%c0, %c0_0, %c0_1] : memref<4x16x128xf32, #tpu.memory_space<vmem>>, vector<4x16x128xf32>
    %cst = arith.constant dense<0.000000e+00> : vector<4x16xf32>
    %1 = vector.multi_reduction <add>, %0, %cst [2] : vector<4x16x128xf32> to vector<4x16xf32>
    %2 = vector.shape_cast %1 : vector<4x16xf32> to vector<4x16x1xf32>
    %cst_2 = arith.constant dense<0.000000e+00> : vector<16x1xf32>
    %3 = vector.multi_reduction <add>, %2, %cst_2 [0] : vector<4x16x1xf32> to vector<16x1xf32>
    %4 = vector.shape_cast %3 : vector<16x1xf32> to vector<1x16x1xf32>
    %cst_3 = arith.constant 0.001953125 : f32
    %5 = vector.broadcast %cst_3 : f32 to vector<1x16x1xf32>
    %6 = arith.mulf %4, %5 : vector<1x16x1xf32>
    %7 = vector.broadcast %6 : vector<1x16x1xf32> to vector<4x16x128xf32>
    %8 = arith.subf %0, %7 : vector<4x16x128xf32>
    %9 = arith.mulf %8, %8 : vector<4x16x128xf32>
    %cst_4 = arith.constant dense<0.000000e+00> : vector<4x16xf32>
    %10 = vector.multi_reduction <add>, %9, %cst_4 [2] : vector<4x16x128xf32> to vector<4x16xf32>
    %11 = vector.shape_cast %10 : vector<4x16xf32> to vector<4x16x1xf32>
    %cst_5 = arith.constant dense<0.000000e+00> : vector<16x1xf32>
    %12 = vector.multi_reduction <add>, %11, %cst_5 [0] : vector<4x16x1xf32> to vector<16x1xf32>
    %13 = vector.shape_cast %12 : vector<16x1xf32> to vector<1x16x1xf32>
    %cst_6 = arith.constant 0.001953125 : f32
    %14 = vector.broadcast %cst_6 : f32 to vector<1x16x1xf32>
    %15 = arith.mulf %13, %14 : vector<1x16x1xf32>
    %cst_7 = arith.constant 9.99999974E-6 : f32
    %16 = vector.broadcast %cst_7 : f32 to vector<1x16x1xf32>
    %17 = arith.addf %15, %16 : vector<1x16x1xf32>
    %18 = math.rsqrt %17 : vector<1x16x1xf32>
    %c0_8 = arith.constant 0 : index
    %c0_9 = arith.constant 0 : index
    %19 = vector.load %arg1[%c0_8, %c0_9] : memref<4x16xf32, #tpu.memory_space<vmem>>, vector<4x16xf32>
    %20 = vector.shape_cast %19 : vector<4x16xf32> to vector<4x16x1xf32>
    %21 = vector.broadcast %18 : vector<1x16x1xf32> to vector<4x16x1xf32>
    %22 = arith.mulf %20, %21 : vector<4x16x1xf32>
    %c0_10 = arith.constant 0 : index
    %c0_11 = arith.constant 0 : index
    %23 = vector.load %arg2[%c0_10, %c0_11] : memref<4x16xf32, #tpu.memory_space<vmem>>, vector<4x16xf32>
    %24 = vector.shape_cast %23 : vector<4x16xf32> to vector<4x16x1xf32>
    %25 = vector.broadcast %22 : vector<4x16x1xf32> to vector<4x16x128xf32>
    %26 = arith.mulf %8, %25 : vector<4x16x128xf32>
    %27 = vector.broadcast %24 : vector<4x16x1xf32> to vector<4x16x128xf32>
    %28 = arith.addf %26, %27 : vector<4x16x128xf32>
    %c0_12 = arith.constant 0 : index
    %c0_13 = arith.constant 0 : index
    %c0_14 = arith.constant 0 : index
    %29 = vector.load %arg3[%c0_12, %c0_13, %c0_14] : memref<4x16x128xf32, #tpu.memory_space<vmem>>, vector<4x16x128xf32>
    tpu.vector_store %arg3[%c0_12, %c0_13, %c0_14], %28 {strides = array<i32>} : memref<4x16x128xf32, #tpu.memory_space<vmem>>, vector<4x16x128xf32>,
    return
  }
}

</mosaic_0001>

<bundles_post_ra>
// kernel: tpu_custom_call.1
= control target key start
LH: loop header
LB: loop body
LE: loop exit
PB: predicated region body
PF: predicated region fallthrough
CT: control target
= control target key end

     0   :  { %8 = vsyncpa [#allocation3], 0  ;;  %s443_s0 = inlined_call_operand.hbm [shape: f32[4,16,128], index: 0, kind: input, shape index: {}]   ;;  %s444_s1 = inlined_call_operand.hbm [shape: f32[4,16], index: 1, kind: input, shape index: {}]   ;;  %s445_s2 = inlined_call_operand.hbm [shape: f32[4,16], index: 2, kind: input, shape index: {}]   ;;  %s446_s3 = inlined_call_operand.hbm [shape: f32[4,16,128], index: 3, kind: output, shape index: {}]  }
   0x1   :  { %9 = vsyncpa [#allocation6], 0 }
   0x2   :  { %10 = vsyncpa [#allocation4], 0  ;;  %s364_s12 = smov [#allocation5]   ;;  %s365_s14 = smov [#allocation2]  }
   0x3   :  { %s29_s13 = sshll.u32 %s364_s12, 4  ;;  %s16_s15 = sshll.u32 %s365_s14, 4  ;;  %s30_s13 = int_to_ptr.vmem [resolvable:$true] %s29_s13  ;;  %s17_s15 = int_to_ptr.vmem [resolvable:$true] %s16_s15 }
   0x4   :  { %s286_s16 = scalar_lea.vmem %s30_s13, 64  ;;  %p291_p1 = scmp.lt.s32.totalorder %s30_s13, %s30_s13 }
   0x5   :  { %p287_p0 = scmp.ne.s32.totalorder %s30_s13, %s286_s16  ;;  %p292_p2 = scmp.lt.s32.totalorder %s286_s16, %s286_s16 }
   0x7   :  { %p293_p3 = por %p292_p2, %p291_p1 }
   0x9   :  { %p294_p4 = pnand %p293_p3, %p287_p0 }
   0xb   :  { %297 = shalt.err (!%p294_p4)
}
   0xc   :  { %32 = dma.hbm_to_vmem [thread:$0]  %s444_s1, 64, %s30_s13, [#allocation6]  }
   0xd   :  { %s306_s19 = scalar_lea.vmem %s17_s15, 1024  ;;  %p311_p6 = scmp.lt.s32.totalorder %s17_s15, %s17_s15 }
   0xe   :  { %p307_p5 = scmp.ne.s32.totalorder %s17_s15, %s306_s19  ;;  %p312_p7 = scmp.lt.s32.totalorder %s306_s19, %s306_s19 }
  0x10   :  { %p313_p8 = por %p312_p7, %p311_p6 }
  0x12   :  { %p314_p9 = pnand %p313_p8, %p307_p5 }
  0x14   :  { %317 = shalt.err (!%p314_p9)
}
  0x15   :  { %s366_s20 = smov 128   ;;  %s367_s21 = smov 8  }
  0x16   :  { %22 = dma.hbm_to_vmem [thread:$0]  %s443_s0, 1024, %s17_s15, [#allocation3], %s366_s20, %s366_s20, %s367_s21  }
  0x17   :  { %s368_s24 = smov [#allocation7]  }
  0x18   :  { %s39_s25 = sshll.u32 %s368_s24, 4  ;;  %s40_s25 = int_to_ptr.vmem [resolvable:$true] %s39_s25 }
  0x19   :  { %s326_s1 = scalar_lea.vmem %s40_s25, 64  ;;  %p331_p11 = scmp.lt.s32.totalorder %s40_s25, %s40_s25 }
  0x1a   :  { %p327_p10 = scmp.ne.s32.totalorder %s40_s25, %s326_s1  ;;  %p332_p12 = scmp.lt.s32.totalorder %s326_s1, %s326_s1 }
  0x1c   :  { %p333_p13 = por %p332_p12, %p331_p11 }
  0x1e   :  { %p334_p0 = pnand %p333_p13, %p327_p10 }
  0x20   :  { %337 = shalt.err (!%p334_p0)
}
  0x21   :  { %42 = dma.hbm_to_vmem [thread:$0]  %s445_s2, 64, %s40_s25, [#allocation6]  }
  0x22   :  { %358 = dma.done.wait [#allocation3], 1024  }
  0x23   :  { %359 = vsyncadd [#allocation3], 4294966272 }
  0x24   :  { %360 = dma.done.wait [#allocation6], 128  }
  0x25   :  { %361 = vsyncadd [#allocation6], 4294967168  ;;  %v54_v0 = vld [vmem:[#allocation2 + $0x10] sm:$0xff]  ;;  %v52_v1 = vld [vmem:[#allocation2] sm:$0xff]  ;;  %v129_v8 = vlaneseq  ;;  %s369_s0 = smov [#allocation8]  }
  0x26   :  { %64 = vadd.xlane.f32.xlu1 %v54_v0  ;;  %60 = vadd.xlane.f32.xlu0 %v52_v1  ;;  %v55_v2 = vld [vmem:[#allocation2 + $0x18] sm:$0xff]  ;;  %v53_v3 = vld [vmem:[#allocation2 + $0x8] sm:$0xff]  ;;  %v56_v5 = vld [vmem:[#allocation2 + $0x20] sm:$0xff]  ;;  %s255_s2 = sshll.u32 %s369_s0, 4  ;;  %s256_s2 = int_to_ptr.vmem [resolvable:$true] %s255_s2 }
  0x27   :  { %v57_v4 = vld [vmem:[#allocation2 + $0x28] sm:$0xff]  ;;  %v402_v6 = vld [vmem:[#allocation2 + $0x38] sm:$0xff]  ;;  %v58_v7 = vld [vmem:[#allocation2 + $0x30] sm:$0xff]  ;;  %v405_v9 = vshrl.u32 %v129_v8, 7  ;;  %s338_s28 = scalar_lea.vmem %s256_s2, 1024  ;;  %p343_p2 = scmp.lt.s32.totalorder %s256_s2, %s256_s2 }
  0x28   :  { %v128_v11 = vld [vmem:[#allocation5] sm:$0xf]  ;;  %v181_v19 = vld [vmem:[#allocation7] sm:$0xf]  ;;  %p339_p1 = scmp.ne.s32.totalorder %s256_s2, %s338_s28  ;;  %p344_p3 = scmp.lt.s32.totalorder %s338_s28, %s338_s28 }
  0x29   :  { %v131_v10 = vsub.s32 0, %v405_v9  ;;  %v142_v13 = vsub.s32 1, %v405_v9  ;;  %v153_v15 = vsub.s32 2, %v405_v9  ;;  %v164_v17 = vsub.s32 3, %v405_v9 }
  0x2a   :  { %66 = vadd.xlane.f32.xlu1 %v55_v2  ;;  %62 = vadd.xlane.f32.xlu0 %v53_v3  ;;  %p345_p4 = por %p344_p3, %p343_p2 }
  0x2b   :  { %v132_v12 = vrot.slane %v128_v11, %v131_v10  ;;  %v143_v14 = vrot.slane %v128_v11, %v142_v13  ;;  %v154_v16 = vrot.slane %v128_v11, %v153_v15  ;;  %v165_v18 = vrot.slane %v128_v11, %v164_v17 }
  0x2c   :  { %v185_v20 = vrot.slane %v181_v19, %v131_v10  ;;  %v196_v51 = vrot.slane %v181_v19, %v142_v13  ;;  %v207_v52 = vrot.slane %v181_v19, %v153_v15  ;;  %v218_v53 = vrot.slane %v181_v19, %v164_v17  ;;  %p346_p5 = pnand %p345_p4, %p339_p1 }
  0x2e   :  { %70 = vadd.xlane.f32.xlu1 %v57_v4  ;;  %68 = vadd.xlane.f32.xlu0 %v56_v5 }
  0x32   :  { %74 = vadd.xlane.f32.xlu1 %v402_v6  ;;  %72 = vadd.xlane.f32.xlu0 %v58_v7 }
  0x43   :  { %138 = vbcast.lane.b32.xlu1 %v132_v12, 264 }
  0x47   :  { %145 = vbcast.lane.b32.xlu1 %v143_v14, 256 }
  0x48   :  { %134 = vbcast.lane.b32.xlu0 %v132_v12, 256 }
  0x4b   :  { %149 = vbcast.lane.b32.xlu1 %v143_v14, 264 }
  0x4c   :  { %156 = vbcast.lane.b32.xlu0 %v154_v16, 256 }
  0x4f   :  { %160 = vbcast.lane.b32.xlu1 %v154_v16, 264 }
  0x50   :  { %167 = vbcast.lane.b32.xlu0 %v165_v18, 256 }
  0x53   :  { %171 = vbcast.lane.b32.xlu1 %v165_v18, 264 }
  0x54   :  { %187 = vbcast.lane.b32.xlu0 %v185_v20, 256 }
  0x57   :  { %191 = vbcast.lane.b32.xlu1 %v185_v20, 264 }
  0xaf   :  { %v65_v21 = vpop.xlane.xlu1 %64  ;;  %v61_v22 = vpop.xlane.xlu0 %60 }
  0xb0   :  { %v76_v27 = vadd.f32 %v65_v21, %v61_v22 }
  0xb3   :  { %v67_v23 = vpop.xlane.xlu1 %66  ;;  %v63_v24 = vpop.xlane.xlu0 %62 }
  0xb4   :  { %v79_v28 = vadd.f32 %v67_v23, %v63_v24 }
  0xb7   :  { %v71_v25 = vpop.xlane.xlu1 %70  ;;  %v69_v26 = vpop.xlane.xlu0 %68 }
  0xb8   :  { %v80_v29 = vadd.f32 %v79_v28, %v71_v25  ;;  %v77_v30 = vadd.f32 %v76_v27, %v69_v26 }
  0xbb   :  { %v75_v31 = vpop.xlane.xlu1 %74  ;;  %v73_v32 = vpop.xlane.xlu0 %72 }
  0xbc   :  { %v81_v33 = vadd.f32 %v80_v29, %v75_v31  ;;  %v78_v34 = vadd.f32 %v77_v30, %v73_v32 }
  0xbe   :  { %v83_v35 = vmul.f32 0.001953125, %v81_v33  ;;  %v82_v36 = vmul.f32 0.001953125, %v78_v34 }
  0xbf   :  { %v135_v56 = vpop.permute.xlu0 %134  ;;  %v139_v61 = vpop.permute.xlu1 %138 }
  0xc0   :  { %v411_v37 = vsub.f32 %v53_v3, %v83_v35  ;;  %v413_v38 = vsub.f32 %v52_v1, %v82_v36  ;;  %v419_v41 = vsub.f32 %v55_v2, %v83_v35  ;;  %v86_v42 = vsub.f32 %v54_v0, %v82_v36 }
  0xc1   :  { %v423_v45 = vsub.f32 %v57_v4, %v83_v35  ;;  %v88_v46 = vsub.f32 %v56_v5, %v82_v36  ;;  %v90_v49 = vsub.f32 %v58_v7, %v82_v36  ;;  %v428_v54 = vsub.f32 %v402_v6, %v83_v35 }
  0xc2   :  { %v93_v39 = vmul.f32 %v411_v37, %v411_v37  ;;  %v92_v40 = vmul.f32 %v413_v38, %v413_v38  ;;  %v95_v43 = vmul.f32 %v419_v41, %v419_v41  ;;  %v94_v44 = vmul.f32 %v86_v42, %v86_v42 }
  0xc3   :  { %v97_v47 = vmul.f32 %v423_v45, %v423_v45  ;;  %v96_v48 = vmul.f32 %v88_v46, %v88_v46  ;;  %v98_v50 = vmul.f32 %v90_v49, %v90_v49  ;;  %v99_v55 = vmul.f32 %v428_v54, %v428_v54  ;;  %v157_v57 = vpop.permute.xlu0 %156  ;;  %v146_v0 = vpop.permute.xlu1 %145 }
  0xc4   :  { %102 = vadd.xlane.f32.xlu1 %v93_v39  ;;  %100 = vadd.xlane.f32.xlu0 %v92_v40 }
  0xc7   :  { %v168_v58 = vpop.permute.xlu0 %167  ;;  %v150_v5 = vpop.permute.xlu1 %149 }
  0xc8   :  { %106 = vadd.xlane.f32.xlu1 %v95_v43  ;;  %104 = vadd.xlane.f32.xlu0 %v94_v44 }
  0xcb   :  { %v188_v59 = vpop.permute.xlu0 %187  ;;  %v161_v8 = vpop.permute.xlu1 %160 }
  0xcc   :  { %110 = vadd.xlane.f32.xlu1 %v97_v47  ;;  %108 = vadd.xlane.f32.xlu0 %v96_v48 }
  0xcf   :  { %v172_v10 = vpop.permute.xlu1 %171 }
  0xd0   :  { %112 = vadd.xlane.f32.xlu0 %v98_v50 }
  0xd3   :  { %v192_v13 = vpop.permute.xlu1 %191 }
  0xdd   :  { %202 = vbcast.lane.b32.xlu1 %v196_v51, 264 }
  0xe1   :  { %213 = vbcast.lane.b32.xlu1 %v207_v52, 264 }
  0xe6   :  { %198 = vbcast.lane.b32.xlu0 %v196_v51, 256 }
  0xea   :  { %209 = vbcast.lane.b32.xlu0 %v207_v52, 256 }
  0xee   :  { %220 = vbcast.lane.b32.xlu0 %v218_v53, 256 }
 0x105   :  { %114 = vadd.xlane.f32.xlu1 %v99_v55 }
 0x116   :  { %224 = vbcast.lane.b32.xlu1 %v218_v53, 264 }
 0x14d   :  { %v101_v60 = vpop.xlane.xlu0 %100  ;;  %v103_v23 = vpop.xlane.xlu1 %102 }
 0x151   :  { %v105_v62 = vpop.xlane.xlu0 %104  ;;  %v107_v28 = vpop.xlane.xlu1 %106 }
 0x152   :  { %v116_v1 = vadd.f32 %v105_v62, %v101_v60  ;;  %v119_v32 = vadd.f32 %v107_v28, %v103_v23 }
 0x155   :  { %v109_v63 = vpop.xlane.xlu0 %108  ;;  %v111_v29 = vpop.xlane.xlu1 %110 }
 0x156   :  { %v117_v2 = vadd.f32 %v116_v1, %v109_v63  ;;  %v120_v33 = vadd.f32 %v119_v32, %v111_v29 }
 0x159   :  { %v113_v3 = vpop.xlane.xlu0 %112  ;;  %v203_v30 = vpop.permute.xlu1 %202 }
 0x15a   :  { %v118_v4 = vadd.f32 %v117_v2, %v113_v3 }
 0x15c   :  { %v122_v6 = vmul.f32 0.001953125, %v118_v4 }
 0x15d   :  { %v199_v9 = vpop.permute.xlu0 %198  ;;  %v214_v31 = vpop.permute.xlu1 %213 }
 0x15e   :  { %v124_v7 = vadd.f32 1e-05, %v122_v6 }
 0x160   :  { %274 = vrsqrt.f32 %v124_v7 }
 0x161   :  { %v210_v11 = vpop.permute.xlu0 %209 }
 0x165   :  { %v221_v18 = vpop.permute.xlu0 %220 }
 0x16d   :  { %v275_v12 = vpop.eup %274 }
 0x16e   :  { %v175_v14 = vmul.f32 %v275_v12, %v146_v0  ;;  %v177_v15 = vmul.f32 %v275_v12, %v157_v57  ;;  %v179_v16 = vmul.f32 %v275_v12, %v168_v58  ;;  %v173_v17 = vmul.f32 %v275_v12, %v135_v56 }
 0x170   :  { %v228_v19 = vmul.f32 %v175_v14, %v86_v42  ;;  %v230_v20 = vmul.f32 %v177_v15, %v88_v46  ;;  %v232_v21 = vmul.f32 %v179_v16, %v90_v49  ;;  %v226_v22 = vmul.f32 %v173_v17, %v413_v38 }
 0x172   :  { %v236_v24 = vadd.f32 %v228_v19, %v199_v9  ;;  %v238_v25 = vadd.f32 %v230_v20, %v210_v11  ;;  %v240_v26 = vadd.f32 %v232_v21, %v221_v18  ;;  %v234_v27 = vadd.f32 %v226_v22, %v188_v59 }
 0x174   :  { %244 = vst [vmem:[#allocation8 + $0x10] sm:$0xff] %v236_v24  ;;  %246 = vst [vmem:[#allocation8 + $0x20] sm:$0xff] %v238_v25 }
 0x175   :  { %248 = vst [vmem:[#allocation8 + $0x30] sm:$0xff] %v240_v26  ;;  %242 = vst [vmem:[#allocation8] sm:$0xff] %v234_v27 }
 0x18e   :  { %v115_v34 = vpop.xlane.xlu1 %114 }
 0x18f   :  { %v121_v35 = vadd.f32 %v120_v33, %v115_v34 }
 0x191   :  { %v123_v36 = vmul.f32 0.001953125, %v121_v35 }
 0x192   :  { %v225_v46 = vpop.permute.xlu1 %224 }
 0x193   :  { %v125_v39 = vadd.f32 1e-05, %v123_v36 }
 0x195   :  { %276 = vrsqrt.f32 %v125_v39 }
 0x1a2   :  { %v277_v38 = vpop.eup %276 }
 0x1a3   :  { %v180_v40 = vmul.f32 %v277_v38, %v172_v10  ;;  %v174_v42 = vmul.f32 %v277_v38, %v139_v61  ;;  %v176_v43 = vmul.f32 %v277_v38, %v150_v5  ;;  %v178_v44 = vmul.f32 %v277_v38, %v161_v8 }
 0x1a5   :  { %v233_v47 = vmul.f32 %v180_v40, %v428_v54  ;;  %v227_v48 = vmul.f32 %v174_v42, %v411_v37  ;;  %v229_v49 = vmul.f32 %v176_v43, %v419_v41  ;;  %v231_v50 = vmul.f32 %v178_v44, %v423_v45 }
 0x1a7   :  { %v241_v51 = vadd.f32 %v233_v47, %v225_v46  ;;  %v235_v52 = vadd.f32 %v227_v48, %v192_v13  ;;  %v237_v53 = vadd.f32 %v229_v49, %v203_v30  ;;  %v239_v55 = vadd.f32 %v231_v50, %v214_v31 }
 0x1a9   :  { %249 = vst [vmem:[#allocation8 + $0x38] sm:$0xff] %v241_v51  ;;  %243 = vst [vmem:[#allocation8 + $0x8] sm:$0xff] %v235_v52 }
 0x1aa   :  { %245 = vst [vmem:[#allocation8 + $0x18] sm:$0xff] %v237_v53  ;;  %247 = vst [vmem:[#allocation8 + $0x28] sm:$0xff] %v239_v55 }
 0x1ab   :  { %349 = shalt.err (!%p346_p5)
}
 0x1ac   :  { %261 = dma.vmem_to_hbm [thread:$0]  %s256_s2, 1024, %s446_s3, [#allocation4], %s366_s20, %s366_s20, %s367_s21  }
 0x1ad   :  { %362 = dma.done.wait [#allocation4], 1024  }
 0x1ae   :  { %363 = vsyncadd [#allocation4], 4294966272 }
 0x1af   :  { %265 = vsyncpa [#allocation3], 1 }
 0x1b0   :  { %266 = vsyncpa [#allocation6], 1 }
 0x1b1   :  { %267 = vsyncpa [#allocation4], 1 }

</bundles_post_ra>
